<compile_context>
chip_gen: v6e
topology: v6e:2x2x1
jax: 0.10.0
libtpu: 0.0.40
codegen_flags: <defaults>
</compile_context>

<pallas_src>
import functools

import jax
import jax.numpy as jnp
from jax.experimental import pallas as pl
from jax.experimental.pallas import tpu as pltpu


# ----------------------------- Pallas kernel ------------------------------ #
def _stem_kernel(pee_ref, peo_ref, poe_ref, poo_ref, wt_ref, shift_ref,
                 out_ref, pbuf, *, c_in, c_pad, h_out, w_out, b_blk):
    """Fused stem for a block of b_blk images (one grid step).

    pee/peo/poe/poo: (b_blk, C, Pp) bf16  row/col-parity phases of the padded
                     input, channel-major, pixels flattened to (Ho+1)*(Wo+1)+1.
    wt_ref:          (C_out, 9*c_pad) bf16  conv weight with BN scale folded,
                     transposed, zero-padded along K per tap (C -> c_pad).
    shift_ref:       (C_out, 1)   f32   folded BN shift.
    out_ref:         (b_blk, C_out, Mp), Mp = Ho*(Wo+1) (junk col at wo==Wo).
    pbuf:            (b_blk*9*c_pad, Mp) bf16 VMEM scratch -- transposed patch
                     matrix (im2col lives only in VMEM, never in HBM).
    """
    mp = h_out * (w_out + 1)
    phase_refs = (pee_ref, peo_ref, poe_ref, poo_ref)
    shift = shift_ref[...]                                     # (C_out, 1) f32
    if c_pad > c_in:
        zero_pad = jnp.zeros((c_pad - c_in, mp), dtype=jnp.bfloat16)

    for b in range(b_blk):
        base = b * 9 * c_pad
        # Build the transposed patch matrix: row block k = tap (kh, kw).
        # Tap (kh, kw) of output pixel (ho, wo) is input pixel (2*ho+kh, 2*wo+kw),
        # i.e. phase (kh%2, kw%2) at flat pixel m + (kh//2)*(Wo+1) + (kw//2) -- a
        # constant lane shift, so every tap is a contiguous static window of one
        # phase array.  Each tap owns an 8-row-aligned block; pad rows are zeroed
        # (the matching weight columns are zero, and 0 * garbage could be NaN).
        for kh in range(3):
            for kw in range(3):
                k = kh * 3 + kw
                p = 2 * (kh % 2) + (kw % 2)
                off = (kh // 2) * (w_out + 1) + (kw // 2)
                row0 = base + k * c_pad
                pbuf[row0:row0 + c_in, :] = phase_refs[p][b, :, off:off + mp]
                if c_pad > c_in:
                    pbuf[row0 + c_in:row0 + c_pad, :] = zero_pad

        patches = pbuf[base:base + 9 * c_pad, :]               # (9*c_pad, Mp) bf16
        acc = jnp.dot(wt_ref[...], patches,
                      preferred_element_type=jnp.float32)      # (C_out, Mp) f32
        # Folded-BN shift + ReLU on the lane-dense layout, stored as NC(HW).
        out_ref[b] = jnp.maximum(acc + shift, 0.0).astype(out_ref.dtype)


# ------------------------------- wrapper ----------------------------------- #
def simple_stem_in(x_nchw, weight_oihw, gamma, beta, running_mean, running_var,
                   eps=1e-5, out_dtype=jnp.float32):
    """SimpleStemIN forward: conv3x3/s2/p1 (no bias) + BN (eval, folded) + ReLU.

    x_nchw: (N, C_in, H, W) f32;  weight_oihw: (C_out, C_in, 3, 3);
    BN params: (C_out,) each.  Returns (N, C_out, H_out, W_out) in `out_dtype`
    (default f32 to match the PyTorch module; pass bf16 when the consumer is bf16).
    """
    N, C, H, W = x_nchw.shape
    C_out = weight_oihw.shape[0]
    Ho = (H + 2 - 3) // 2 + 1
    Wo = (W + 2 - 3) // 2 + 1
    Hp, Wp = 2 * Ho + 2, 2 * Wo + 2          # conv pad + round-up-to-even
    Pp = (Ho + 1) * (Wo + 1) + 1             # flattened phase pixels (+1 halo)
    Mp = Ho * (Wo + 1)                       # output cols incl. junk at wo == Wo
    c_pad = -(-C // 8) * 8                   # sublane-aligned channels per tap

    # Batch a few images per grid step when the spatial extent is tiny, so the
    # matmul/stores are not dwarfed by per-grid-step overhead (~0.35us).
    b_blk = max(1, min(N, 512 // max(Mp, 1)))
    while N % b_blk:
        b_blk -= 1

    # Glue (cheap): cast to bf16 FIRST, then pad and split into parity phases.
    xp = jnp.pad(x_nchw.astype(jnp.bfloat16),
                 ((0, 0), (0, 0), (1, Hp - H - 1), (1, Wp - W - 1)))

    def phase(dh, dw):
        ph = xp[:, :, dh::2, dw::2]                              # (N, C, Ho+1, Wo+1)
        ph = ph.reshape(N, C, (Ho + 1) * (Wo + 1))
        return jnp.pad(ph, ((0, 0), (0, 0), (0, 1)))             # halo for (2,2) tap

    p_ee, p_eo, p_oe, p_oo = phase(0, 0), phase(0, 1), phase(1, 0), phase(1, 1)

    # Fold BN (eval mode, running stats) into weight (scale) and a shift vector.
    scale = gamma / jnp.sqrt(running_var + eps)                  # (C_out,)
    shift = (beta - running_mean * scale).reshape(C_out, 1).astype(jnp.float32)
    w_scaled = weight_oihw * scale[:, None, None, None]          # (C_out, C, 3, 3)
    w_t = jnp.transpose(w_scaled, (0, 2, 3, 1))                  # (C_out, 3, 3, C)
    w_t = jnp.pad(w_t, ((0, 0), (0, 0), (0, 0), (0, c_pad - C)))  # zero K pad
    w_t = w_t.reshape(C_out, 9 * c_pad).astype(jnp.bfloat16)     # (C_out, 9*c_pad)

    kern = functools.partial(_stem_kernel, c_in=C, c_pad=c_pad,
                             h_out=Ho, w_out=Wo, b_blk=b_blk)

    out_isz = jnp.dtype(out_dtype).itemsize
    # VMEM budget from the actual blocks (double-buffered inputs/outputs) + headroom.
    block_bytes = (2 * 4 * b_blk * C * Pp * 2           # 4 phase blocks, 2 buffers
                   + 2 * C_out * 9 * c_pad * 2          # weights
                   + 2 * C_out * 4                      # shift
                   + 2 * b_blk * C_out * Mp * out_isz   # output block, 2 buffers
                   + b_blk * 9 * c_pad * Mp * 2)        # pbuf scratch
    vmem_limit = min(int(block_bytes * 1.3) + (2 << 20), 64 * 1024 * 1024)

    flops = 2 * N * Mp * (9 * c_pad) * C_out
    bytes_accessed = (4 * N * C * Pp * 2 + C_out * 9 * c_pad * 2 + C_out * 4
                      + N * C_out * Mp * out_isz)

    out = pl.pallas_call(
        kern,
        out_shape=jax.ShapeDtypeStruct((N, C_out, Mp), out_dtype),
        grid_spec=pltpu.PrefetchScalarGridSpec(
            num_scalar_prefetch=0,
            grid=(N // b_blk,),
            in_specs=[
                pl.BlockSpec((b_blk, C, Pp), lambda n: (n, 0, 0)),   # p_ee
                pl.BlockSpec((b_blk, C, Pp), lambda n: (n, 0, 0)),   # p_eo
                pl.BlockSpec((b_blk, C, Pp), lambda n: (n, 0, 0)),   # p_oe
                pl.BlockSpec((b_blk, C, Pp), lambda n: (n, 0, 0)),   # p_oo
                pl.BlockSpec((C_out, 9 * c_pad), lambda n: (0, 0)),  # weights
                pl.BlockSpec((C_out, 1), lambda n: (0, 0)),          # BN shift
            ],
            out_specs=pl.BlockSpec((b_blk, C_out, Mp), lambda n: (n, 0, 0)),
            scratch_shapes=[pltpu.VMEM((b_blk * 9 * c_pad, Mp), jnp.bfloat16)],
        ),
        compiler_params=pltpu.CompilerParams(
            dimension_semantics=("parallel",),
            vmem_limit_bytes=vmem_limit),
        cost_estimate=pl.CostEstimate(flops=flops, transcendentals=0,
                                      bytes_accessed=bytes_accessed),
    )(p_ee, p_eo, p_oe, p_oo, w_t, shift)

    # Drop the junk column (wo == Wo); result is already NCHW (no transpose needed).
    out = out.reshape(N, C_out, Ho, Wo + 1)[:, :, :, :Wo]
    return out


# ----------------------------- reference (JAX) ----------------------------- #
def reference(x_nchw, weight_oihw, gamma, beta, running_mean, running_var, eps=1e-5):
    y = jax.lax.conv_general_dilated(
        x_nchw, weight_oihw, window_strides=(2, 2),
        padding=((1, 1), (1, 1)),
        dimension_numbers=("NCHW", "OIHW", "NCHW"))
    scale = gamma / jnp.sqrt(running_var + eps)
    shift = beta - running_mean * scale
    y = y * scale[None, :, None, None] + shift[None, :, None, None]
    return jnp.maximum(y, 0.0)


if __name__ == "__main__":
    # Small shapes consistent with the stem: in_planes=4, out_planes=8, 16x16 input.
    N, C_in, H, W = 2, 4, 16, 16
    C_out = 8

    key = jax.random.PRNGKey(0)
    kx, kw, kg, kb, km, kv = jax.random.split(key, 6)

    x = jax.random.normal(kx, (N, C_in, H, W), dtype=jnp.float32)
    weight = jax.random.normal(kw, (C_out, C_in, 3, 3), dtype=jnp.float32) * 0.1
    gamma = 1.0 + 0.1 * jax.random.normal(kg, (C_out,), dtype=jnp.float32)
    beta = 0.1 * jax.random.normal(kb, (C_out,), dtype=jnp.float32)
    running_mean = 0.05 * jax.random.normal(km, (C_out,), dtype=jnp.float32)
    running_var = 1.0 + 0.1 * jax.random.uniform(kv, (C_out,), dtype=jnp.float32)

    fwd = jax.jit(simple_stem_in)
    out = jax.block_until_ready(
        fwd(x, weight, gamma, beta, running_mean, running_var))

    ref = reference(x, weight, gamma, beta, running_mean, running_var)
    assert out.shape == (N, C_out, H // 2, W // 2), out.shape
    # bf16 matmul inputs -> slightly looser tolerance than the pure-f32 path.
    assert jnp.allclose(out, ref, atol=5e-2, rtol=5e-2), "mismatch vs reference"

    print("KERNEL_OK")
</pallas_src>

<mosaic_0001>
module attributes {stable_mosaic.version = 11 : i64} {
  func.func @_stem_kernel(%arg0: i32, %arg1: memref<2x4x82xbf16, #tpu.memory_space<vmem>>, %arg2: memref<2x4x82xbf16, #tpu.memory_space<vmem>>, %arg3: memref<2x4x82xbf16, #tpu.memory_space<vmem>>, %arg4: memref<2x4x82xbf16, #tpu.memory_space<vmem>>, %arg5: memref<8x72xbf16, #tpu.memory_space<vmem>>, %arg6: memref<8x1xf32, #tpu.memory_space<vmem>>, %arg7: memref<2x8x72xf32, #tpu.memory_space<vmem>>, %arg8: memref<144x72xbf16, #tpu.memory_space<vmem>>) attributes {dimension_semantics = [#tpu.dimension_semantics<parallel>], iteration_bounds = array<i64: 1>, scalar_prefetch = 0 : i64, scratch_operands = 1 : i64, tpu.core_type = #tpu.core_type<tc>, window_params = [{transform_indices = @transform_0, window_bounds = array<i64: 2, 4, 82>}, {transform_indices = @transform_1, window_bounds = array<i64: 2, 4, 82>}, {transform_indices = @transform_2, window_bounds = array<i64: 2, 4, 82>}, {transform_indices = @transform_3, window_bounds = array<i64: 2, 4, 82>}, {pipeline_mode = #tpu.pipeline_mode<synchronous>, transform_indices = @transform_4, window_bounds = array<i64: 8, 72>}, {pipeline_mode = #tpu.pipeline_mode<synchronous>, transform_indices = @transform_5, window_bounds = array<i64: 8, 1>}, {transform_indices = @transform_6, window_bounds = array<i64: 2, 8, 72>}]} {
    %c0 = arith.constant 0 : index
    %c0_0 = arith.constant 0 : index
    %0 = vector.load %arg6[%c0, %c0_0] : memref<8x1xf32, #tpu.memory_space<vmem>>, vector<8x1xf32>
    %cst = arith.constant 0.000000e+00 : bf16
    %1 = vector.broadcast %cst : bf16 to vector<4x72xbf16>
    %c0_1 = arith.constant 0 : index
    %c0_2 = arith.constant 0 : index
    %c0_3 = arith.constant 0 : index
    %2 = vector.load %arg1[%c0_1, %c0_2, %c0_3] : memref<2x4x82xbf16, #tpu.memory_space<vmem>>, vector<1x4x72xbf16>
    %3 = vector.shape_cast %2 : vector<1x4x72xbf16> to vector<4x72xbf16>
    %c0_4 = arith.constant 0 : index
    %c0_5 = arith.constant 0 : index
    %4 = vector.load %arg8[%c0_4, %c0_5] : memref<144x72xbf16, #tpu.memory_space<vmem>>, vector<4x72xbf16>
    tpu.vector_store %arg8[%c0_4, %c0_5], %3 {strides = array<i32>} : memref<144x72xbf16, #tpu.memory_space<vmem>>, vector<4x72xbf16>,
    %c4 = arith.constant 4 : index
    %c0_6 = arith.constant 0 : index
    %5 = vector.load %arg8[%c4, %c0_6] : memref<144x72xbf16, #tpu.memory_space<vmem>>, vector<4x72xbf16>
    tpu.vector_store %arg8[%c4, %c0_6], %1 {strides = array<i32>} : memref<144x72xbf16, #tpu.memory_space<vmem>>, vector<4x72xbf16>,
    %c0_7 = arith.constant 0 : index
    %c0_8 = arith.constant 0 : index
    %c0_9 = arith.constant 0 : index
    %6 = vector.load %arg2[%c0_7, %c0_8, %c0_9] : memref<2x4x82xbf16, #tpu.memory_space<vmem>>, vector<1x4x72xbf16>
    %7 = vector.shape_cast %6 : vector<1x4x72xbf16> to vector<4x72xbf16>
    %c8 = arith.constant 8 : index
    %c0_10 = arith.constant 0 : index
    %8 = vector.load %arg8[%c8, %c0_10] : memref<144x72xbf16, #tpu.memory_space<vmem>>, vector<4x72xbf16>
    tpu.vector_store %arg8[%c8, %c0_10], %7 {strides = array<i32>} : memref<144x72xbf16, #tpu.memory_space<vmem>>, vector<4x72xbf16>,
    %c12 = arith.constant 12 : index
    %c0_11 = arith.constant 0 : index
    %9 = vector.load %arg8[%c12, %c0_11] : memref<144x72xbf16, #tpu.memory_space<vmem>>, vector<4x72xbf16>
    tpu.vector_store %arg8[%c12, %c0_11], %1 {strides = array<i32>} : memref<144x72xbf16, #tpu.memory_space<vmem>>, vector<4x72xbf16>,
    %c0_12 = arith.constant 0 : index
    %c0_13 = arith.constant 0 : index
    %c1 = arith.constant 1 : index
    %10 = vector.load %arg1[%c0_12, %c0_13, %c1] : memref<2x4x82xbf16, #tpu.memory_space<vmem>>, vector<1x4x72xbf16>
    %11 = vector.shape_cast %10 : vector<1x4x72xbf16> to vector<4x72xbf16>
    %c16 = arith.constant 16 : index
    %c0_14 = arith.constant 0 : index
    %12 = vector.load %arg8[%c16, %c0_14] : memref<144x72xbf16, #tpu.memory_space<vmem>>, vector<4x72xbf16>
    tpu.vector_store %arg8[%c16, %c0_14], %11 {strides = array<i32>} : memref<144x72xbf16, #tpu.memory_space<vmem>>, vector<4x72xbf16>,
    %c20 = arith.constant 20 : index
    %c0_15 = arith.constant 0 : index
    %13 = vector.load %arg8[%c20, %c0_15] : memref<144x72xbf16, #tpu.memory_space<vmem>>, vector<4x72xbf16>
    tpu.vector_store %arg8[%c20, %c0_15], %1 {strides = array<i32>} : memref<144x72xbf16, #tpu.memory_space<vmem>>, vector<4x72xbf16>,
    %c0_16 = arith.constant 0 : index
    %c0_17 = arith.constant 0 : index
    %c0_18 = arith.constant 0 : index
    %14 = vector.load %arg3[%c0_16, %c0_17, %c0_18] : memref<2x4x82xbf16, #tpu.memory_space<vmem>>, vector<1x4x72xbf16>
    %15 = vector.shape_cast %14 : vector<1x4x72xbf16> to vector<4x72xbf16>
    %c24 = arith.constant 24 : index
    %c0_19 = arith.constant 0 : index
    %16 = vector.load %arg8[%c24, %c0_19] : memref<144x72xbf16, #tpu.memory_space<vmem>>, vector<4x72xbf16>
    tpu.vector_store %arg8[%c24, %c0_19], %15 {strides = array<i32>} : memref<144x72xbf16, #tpu.memory_space<vmem>>, vector<4x72xbf16>,
    %c28 = arith.constant 28 : index
    %c0_20 = arith.constant 0 : index
    %17 = vector.load %arg8[%c28, %c0_20] : memref<144x72xbf16, #tpu.memory_space<vmem>>, vector<4x72xbf16>
    tpu.vector_store %arg8[%c28, %c0_20], %1 {strides = array<i32>} : memref<144x72xbf16, #tpu.memory_space<vmem>>, vector<4x72xbf16>,
    %c0_21 = arith.constant 0 : index
    %c0_22 = arith.constant 0 : index
    %c0_23 = arith.constant 0 : index
    %18 = vector.load %arg4[%c0_21, %c0_22, %c0_23] : memref<2x4x82xbf16, #tpu.memory_space<vmem>>, vector<1x4x72xbf16>
    %19 = vector.shape_cast %18 : vector<1x4x72xbf16> to vector<4x72xbf16>
    %c32 = arith.constant 32 : index
    %c0_24 = arith.constant 0 : index
    %20 = vector.load %arg8[%c32, %c0_24] : memref<144x72xbf16, #tpu.memory_space<vmem>>, vector<4x72xbf16>
    tpu.vector_store %arg8[%c32, %c0_24], %19 {strides = array<i32>} : memref<144x72xbf16, #tpu.memory_space<vmem>>, vector<4x72xbf16>,
    %c36 = arith.constant 36 : index
    %c0_25 = arith.constant 0 : index
    %21 = vector.load %arg8[%c36, %c0_25] : memref<144x72xbf16, #tpu.memory_space<vmem>>, vector<4x72xbf16>
    tpu.vector_store %arg8[%c36, %c0_25], %1 {strides = array<i32>} : memref<144x72xbf16, #tpu.memory_space<vmem>>, vector<4x72xbf16>,
    %c0_26 = arith.constant 0 : index
    %c0_27 = arith.constant 0 : index
    %c1_28 = arith.constant 1 : index
    %22 = vector.load %arg3[%c0_26, %c0_27, %c1_28] : memref<2x4x82xbf16, #tpu.memory_space<vmem>>, vector<1x4x72xbf16>
    %23 = vector.shape_cast %22 : vector<1x4x72xbf16> to vector<4x72xbf16>
    %c40 = arith.constant 40 : index
    %c0_29 = arith.constant 0 : index
    %24 = vector.load %arg8[%c40, %c0_29] : memref<144x72xbf16, #tpu.memory_space<vmem>>, vector<4x72xbf16>
    tpu.vector_store %arg8[%c40, %c0_29], %23 {strides = array<i32>} : memref<144x72xbf16, #tpu.memory_space<vmem>>, vector<4x72xbf16>,
    %c44 = arith.constant 44 : index
    %c0_30 = arith.constant 0 : index
    %25 = vector.load %arg8[%c44, %c0_30] : memref<144x72xbf16, #tpu.memory_space<vmem>>, vector<4x72xbf16>
    tpu.vector_store %arg8[%c44, %c0_30], %1 {strides = array<i32>} : memref<144x72xbf16, #tpu.memory_space<vmem>>, vector<4x72xbf16>,
    %c0_31 = arith.constant 0 : index
    %c0_32 = arith.constant 0 : index
    %c9 = arith.constant 9 : index
    %26 = vector.load %arg1[%c0_31, %c0_32, %c9] : memref<2x4x82xbf16, #tpu.memory_space<vmem>>, vector<1x4x72xbf16>
    %27 = vector.shape_cast %26 : vector<1x4x72xbf16> to vector<4x72xbf16>
    %c48 = arith.constant 48 : index
    %c0_33 = arith.constant 0 : index
    %28 = vector.load %arg8[%c48, %c0_33] : memref<144x72xbf16, #tpu.memory_space<vmem>>, vector<4x72xbf16>
    tpu.vector_store %arg8[%c48, %c0_33], %27 {strides = array<i32>} : memref<144x72xbf16, #tpu.memory_space<vmem>>, vector<4x72xbf16>,
    %c52 = arith.constant 52 : index
    %c0_34 = arith.constant 0 : index
    %29 = vector.load %arg8[%c52, %c0_34] : memref<144x72xbf16, #tpu.memory_space<vmem>>, vector<4x72xbf16>
    tpu.vector_store %arg8[%c52, %c0_34], %1 {strides = array<i32>} : memref<144x72xbf16, #tpu.memory_space<vmem>>, vector<4x72xbf16>,
    %c0_35 = arith.constant 0 : index
    %c0_36 = arith.constant 0 : index
    %c9_37 = arith.constant 9 : index
    %30 = vector.load %arg2[%c0_35, %c0_36, %c9_37] : memref<2x4x82xbf16, #tpu.memory_space<vmem>>, vector<1x4x72xbf16>
    %31 = vector.shape_cast %30 : vector<1x4x72xbf16> to vector<4x72xbf16>
    %c56 = arith.constant 56 : index
    %c0_38 = arith.constant 0 : index
    %32 = vector.load %arg8[%c56, %c0_38] : memref<144x72xbf16, #tpu.memory_space<vmem>>, vector<4x72xbf16>
    tpu.vector_store %arg8[%c56, %c0_38], %31 {strides = array<i32>} : memref<144x72xbf16, #tpu.memory_space<vmem>>, vector<4x72xbf16>,
    %c60 = arith.constant 60 : index
    %c0_39 = arith.constant 0 : index
    %33 = vector.load %arg8[%c60, %c0_39] : memref<144x72xbf16, #tpu.memory_space<vmem>>, vector<4x72xbf16>
    tpu.vector_store %arg8[%c60, %c0_39], %1 {strides = array<i32>} : memref<144x72xbf16, #tpu.memory_space<vmem>>, vector<4x72xbf16>,
    %c0_40 = arith.constant 0 : index
    %c0_41 = arith.constant 0 : index
    %c10 = arith.constant 10 : index
    %34 = vector.load %arg1[%c0_40, %c0_41, %c10] : memref<2x4x82xbf16, #tpu.memory_space<vmem>>, vector<1x4x72xbf16>
    %35 = vector.shape_cast %34 : vector<1x4x72xbf16> to vector<4x72xbf16>
    %c64 = arith.constant 64 : index
    %c0_42 = arith.constant 0 : index
    %36 = vector.load %arg8[%c64, %c0_42] : memref<144x72xbf16, #tpu.memory_space<vmem>>, vector<4x72xbf16>
    tpu.vector_store %arg8[%c64, %c0_42], %35 {strides = array<i32>} : memref<144x72xbf16, #tpu.memory_space<vmem>>, vector<4x72xbf16>,
    %c68 = arith.constant 68 : index
    %c0_43 = arith.constant 0 : index
    %37 = vector.load %arg8[%c68, %c0_43] : memref<144x72xbf16, #tpu.memory_space<vmem>>, vector<4x72xbf16>
    tpu.vector_store %arg8[%c68, %c0_43], %1 {strides = array<i32>} : memref<144x72xbf16, #tpu.memory_space<vmem>>, vector<4x72xbf16>,
    %c0_44 = arith.constant 0 : index
    %c0_45 = arith.constant 0 : index
    %38 = vector.load %arg8[%c0_44, %c0_45] : memref<144x72xbf16, #tpu.memory_space<vmem>>, vector<72x72xbf16>
    %c0_46 = arith.constant 0 : index
    %c0_47 = arith.constant 0 : index
    %39 = vector.load %arg5[%c0_46, %c0_47] : memref<8x72xbf16, #tpu.memory_space<vmem>>, vector<8x72xbf16>
    %cst_48 = arith.constant dense<0.000000e+00> : vector<8x72xf32>
    %40 = tpu.matmul %39, %38, %cst_48 {dimension_numbers = #tpu.dot_dimension_numbers<[1], [0], [0], [1], [0, 0, 1, 1], [], []>} : vector<8x72xbf16>, vector<72x72xbf16>, vector<8x72xf32> -> vector<8x72xf32>
    %41 = vector.broadcast %0 : vector<8x1xf32> to vector<8x72xf32>
    %42 = arith.addf %40, %41 : vector<8x72xf32>
    %cst_49 = arith.constant 0.000000e+00 : f32
    %43 = vector.broadcast %cst_49 : f32 to vector<8x72xf32>
    %44 = arith.maximumf %42, %43 : vector<8x72xf32>
    %c0_50 = arith.constant 0 : index
    %c0_51 = arith.constant 0 : index
    %c0_52 = arith.constant 0 : index
    %45 = vector.load %arg7[%c0_50, %c0_51, %c0_52] : memref<2x8x72xf32, #tpu.memory_space<vmem>>, vector<1x8x72xf32>
    %46 = vector.shape_cast %45 : vector<1x8x72xf32> to vector<8x72xf32>
    %47 = vector.shape_cast %44 : vector<8x72xf32> to vector<1x8x72xf32>
    tpu.vector_store %arg7[%c0_50, %c0_51, %c0_52], %47 {strides = array<i32>} : memref<2x8x72xf32, #tpu.memory_space<vmem>>, vector<1x8x72xf32>,
    %c1_53 = arith.constant 1 : index
    %c0_54 = arith.constant 0 : index
    %c0_55 = arith.constant 0 : index
    %48 = vector.load %arg1[%c1_53, %c0_54, %c0_55] : memref<2x4x82xbf16, #tpu.memory_space<vmem>>, vector<1x4x72xbf16>
    %49 = vector.shape_cast %48 : vector<1x4x72xbf16> to vector<4x72xbf16>
    %c72 = arith.constant 72 : index
    %c0_56 = arith.constant 0 : index
    %50 = vector.load %arg8[%c72, %c0_56] : memref<144x72xbf16, #tpu.memory_space<vmem>>, vector<4x72xbf16>
    tpu.vector_store %arg8[%c72, %c0_56], %49 {strides = array<i32>} : memref<144x72xbf16, #tpu.memory_space<vmem>>, vector<4x72xbf16>,
    %c76 = arith.constant 76 : index
    %c0_57 = arith.constant 0 : index
    %51 = vector.load %arg8[%c76, %c0_57] : memref<144x72xbf16, #tpu.memory_space<vmem>>, vector<4x72xbf16>
    tpu.vector_store %arg8[%c76, %c0_57], %1 {strides = array<i32>} : memref<144x72xbf16, #tpu.memory_space<vmem>>, vector<4x72xbf16>,
    %c1_58 = arith.constant 1 : index
    %c0_59 = arith.constant 0 : index
    %c0_60 = arith.constant 0 : index
    %52 = vector.load %arg2[%c1_58, %c0_59, %c0_60] : memref<2x4x82xbf16, #tpu.memory_space<vmem>>, vector<1x4x72xbf16>
    %53 = vector.shape_cast %52 : vector<1x4x72xbf16> to vector<4x72xbf16>
    %c80 = arith.constant 80 : index
    %c0_61 = arith.constant 0 : index
    %54 = vector.load %arg8[%c80, %c0_61] : memref<144x72xbf16, #tpu.memory_space<vmem>>, vector<4x72xbf16>
    tpu.vector_store %arg8[%c80, %c0_61], %53 {strides = array<i32>} : memref<144x72xbf16, #tpu.memory_space<vmem>>, vector<4x72xbf16>,
    %c84 = arith.constant 84 : index
    %c0_62 = arith.constant 0 : index
    %55 = vector.load %arg8[%c84, %c0_62] : memref<144x72xbf16, #tpu.memory_space<vmem>>, vector<4x72xbf16>
    tpu.vector_store %arg8[%c84, %c0_62], %1 {strides = array<i32>} : memref<144x72xbf16, #tpu.memory_space<vmem>>, vector<4x72xbf16>,
    %c1_63 = arith.constant 1 : index
    %c0_64 = arith.constant 0 : index
    %c1_65 = arith.constant 1 : index
    %56 = vector.load %arg1[%c1_63, %c0_64, %c1_65] : memref<2x4x82xbf16, #tpu.memory_space<vmem>>, vector<1x4x72xbf16>
    %57 = vector.shape_cast %56 : vector<1x4x72xbf16> to vector<4x72xbf16>
    %c88 = arith.constant 88 : index
    %c0_66 = arith.constant 0 : index
    %58 = vector.load %arg8[%c88, %c0_66] : memref<144x72xbf16, #tpu.memory_space<vmem>>, vector<4x72xbf16>
    tpu.vector_store %arg8[%c88, %c0_66], %57 {strides = array<i32>} : memref<144x72xbf16, #tpu.memory_space<vmem>>, vector<4x72xbf16>,
    %c92 = arith.constant 92 : index
    %c0_67 = arith.constant 0 : index
    %59 = vector.load %arg8[%c92, %c0_67] : memref<144x72xbf16, #tpu.memory_space<vmem>>, vector<4x72xbf16>
    tpu.vector_store %arg8[%c92, %c0_67], %1 {strides = array<i32>} : memref<144x72xbf16, #tpu.memory_space<vmem>>, vector<4x72xbf16>,
    %c1_68 = arith.constant 1 : index
    %c0_69 = arith.constant 0 : index
    %c0_70 = arith.constant 0 : index
    %60 = vector.load %arg3[%c1_68, %c0_69, %c0_70] : memref<2x4x82xbf16, #tpu.memory_space<vmem>>, vector<1x4x72xbf16>
    %61 = vector.shape_cast %60 : vector<1x4x72xbf16> to vector<4x72xbf16>
    %c96 = arith.constant 96 : index
    %c0_71 = arith.constant 0 : index
    %62 = vector.load %arg8[%c96, %c0_71] : memref<144x72xbf16, #tpu.memory_space<vmem>>, vector<4x72xbf16>
    tpu.vector_store %arg8[%c96, %c0_71], %61 {strides = array<i32>} : memref<144x72xbf16, #tpu.memory_space<vmem>>, vector<4x72xbf16>,
    %c100 = arith.constant 100 : index
    %c0_72 = arith.constant 0 : index
    %63 = vector.load %arg8[%c100, %c0_72] : memref<144x72xbf16, #tpu.memory_space<vmem>>, vector<4x72xbf16>
    tpu.vector_store %arg8[%c100, %c0_72], %1 {strides = array<i32>} : memref<144x72xbf16, #tpu.memory_space<vmem>>, vector<4x72xbf16>,
    %c1_73 = arith.constant 1 : index
    %c0_74 = arith.constant 0 : index
    %c0_75 = arith.constant 0 : index
    %64 = vector.load %arg4[%c1_73, %c0_74, %c0_75] : memref<2x4x82xbf16, #tpu.memory_space<vmem>>, vector<1x4x72xbf16>
    %65 = vector.shape_cast %64 : vector<1x4x72xbf16> to vector<4x72xbf16>
    %c104 = arith.constant 104 : index
    %c0_76 = arith.constant 0 : index
    %66 = vector.load %arg8[%c104, %c0_76] : memref<144x72xbf16, #tpu.memory_space<vmem>>, vector<4x72xbf16>
    tpu.vector_store %arg8[%c104, %c0_76], %65 {strides = array<i32>} : memref<144x72xbf16, #tpu.memory_space<vmem>>, vector<4x72xbf16>,
    %c108 = arith.constant 108 : index
    %c0_77 = arith.constant 0 : index
    %67 = vector.load %arg8[%c108, %c0_77] : memref<144x72xbf16, #tpu.memory_space<vmem>>, vector<4x72xbf16>
    tpu.vector_store %arg8[%c108, %c0_77], %1 {strides = array<i32>} : memref<144x72xbf16, #tpu.memory_space<vmem>>, vector<4x72xbf16>,
    %c1_78 = arith.constant 1 : index
    %c0_79 = arith.constant 0 : index
    %c1_80 = arith.constant 1 : index
    %68 = vector.load %arg3[%c1_78, %c0_79, %c1_80] : memref<2x4x82xbf16, #tpu.memory_space<vmem>>, vector<1x4x72xbf16>
    %69 = vector.shape_cast %68 : vector<1x4x72xbf16> to vector<4x72xbf16>
    %c112 = arith.constant 112 : index
    %c0_81 = arith.constant 0 : index
    %70 = vector.load %arg8[%c112, %c0_81] : memref<144x72xbf16, #tpu.memory_space<vmem>>, vector<4x72xbf16>
    tpu.vector_store %arg8[%c112, %c0_81], %69 {strides = array<i32>} : memref<144x72xbf16, #tpu.memory_space<vmem>>, vector<4x72xbf16>,
    %c116 = arith.constant 116 : index
    %c0_82 = arith.constant 0 : index
    %71 = vector.load %arg8[%c116, %c0_82] : memref<144x72xbf16, #tpu.memory_space<vmem>>, vector<4x72xbf16>
    tpu.vector_store %arg8[%c116, %c0_82], %1 {strides = array<i32>} : memref<144x72xbf16, #tpu.memory_space<vmem>>, vector<4x72xbf16>,
    %c1_83 = arith.constant 1 : index
    %c0_84 = arith.constant 0 : index
    %c9_85 = arith.constant 9 : index
    %72 = vector.load %arg1[%c1_83, %c0_84, %c9_85] : memref<2x4x82xbf16, #tpu.memory_space<vmem>>, vector<1x4x72xbf16>
    %73 = vector.shape_cast %72 : vector<1x4x72xbf16> to vector<4x72xbf16>
    %c120 = arith.constant 120 : index
    %c0_86 = arith.constant 0 : index
    %74 = vector.load %arg8[%c120, %c0_86] : memref<144x72xbf16, #tpu.memory_space<vmem>>, vector<4x72xbf16>
    tpu.vector_store %arg8[%c120, %c0_86], %73 {strides = array<i32>} : memref<144x72xbf16, #tpu.memory_space<vmem>>, vector<4x72xbf16>,
    %c124 = arith.constant 124 : index
    %c0_87 = arith.constant 0 : index
    %75 = vector.load %arg8[%c124, %c0_87] : memref<144x72xbf16, #tpu.memory_space<vmem>>, vector<4x72xbf16>
    tpu.vector_store %arg8[%c124, %c0_87], %1 {strides = array<i32>} : memref<144x72xbf16, #tpu.memory_space<vmem>>, vector<4x72xbf16>,
    %c1_88 = arith.constant 1 : index
    %c0_89 = arith.constant 0 : index
    %c9_90 = arith.constant 9 : index
    %76 = vector.load %arg2[%c1_88, %c0_89, %c9_90] : memref<2x4x82xbf16, #tpu.memory_space<vmem>>, vector<1x4x72xbf16>
    %77 = vector.shape_cast %76 : vector<1x4x72xbf16> to vector<4x72xbf16>
    %c128 = arith.constant 128 : index
    %c0_91 = arith.constant 0 : index
    %78 = vector.load %arg8[%c128, %c0_91] : memref<144x72xbf16, #tpu.memory_space<vmem>>, vector<4x72xbf16>
    tpu.vector_store %arg8[%c128, %c0_91], %77 {strides = array<i32>} : memref<144x72xbf16, #tpu.memory_space<vmem>>, vector<4x72xbf16>,
    %c132 = arith.constant 132 : index
    %c0_92 = arith.constant 0 : index
    %79 = vector.load %arg8[%c132, %c0_92] : memref<144x72xbf16, #tpu.memory_space<vmem>>, vector<4x72xbf16>
    tpu.vector_store %arg8[%c132, %c0_92], %1 {strides = array<i32>} : memref<144x72xbf16, #tpu.memory_space<vmem>>, vector<4x72xbf16>,
    %c1_93 = arith.constant 1 : index
    %c0_94 = arith.constant 0 : index
    %c10_95 = arith.constant 10 : index
    %80 = vector.load %arg1[%c1_93, %c0_94, %c10_95] : memref<2x4x82xbf16, #tpu.memory_space<vmem>>, vector<1x4x72xbf16>
    %81 = vector.shape_cast %80 : vector<1x4x72xbf16> to vector<4x72xbf16>
    %c136 = arith.constant 136 : index
    %c0_96 = arith.constant 0 : index
    %82 = vector.load %arg8[%c136, %c0_96] : memref<144x72xbf16, #tpu.memory_space<vmem>>, vector<4x72xbf16>
    tpu.vector_store %arg8[%c136, %c0_96], %81 {strides = array<i32>} : memref<144x72xbf16, #tpu.memory_space<vmem>>, vector<4x72xbf16>,
    %c140 = arith.constant 140 : index
    %c0_97 = arith.constant 0 : index
    %83 = vector.load %arg8[%c140, %c0_97] : memref<144x72xbf16, #tpu.memory_space<vmem>>, vector<4x72xbf16>
    tpu.vector_store %arg8[%c140, %c0_97], %1 {strides = array<i32>} : memref<144x72xbf16, #tpu.memory_space<vmem>>, vector<4x72xbf16>,
    %c72_98 = arith.constant 72 : index
    %c0_99 = arith.constant 0 : index
    %84 = vector.load %arg8[%c72_98, %c0_99] : memref<144x72xbf16, #tpu.memory_space<vmem>>, vector<72x72xbf16>
    %c0_100 = arith.constant 0 : index
    %c0_101 = arith.constant 0 : index
    %85 = vector.load %arg5[%c0_100, %c0_101] : memref<8x72xbf16, #tpu.memory_space<vmem>>, vector<8x72xbf16>
    %cst_102 = arith.constant dense<0.000000e+00> : vector<8x72xf32>
    %86 = tpu.matmul %85, %84, %cst_102 {dimension_numbers = #tpu.dot_dimension_numbers<[1], [0], [0], [1], [0, 0, 1, 1], [], []>} : vector<8x72xbf16>, vector<72x72xbf16>, vector<8x72xf32> -> vector<8x72xf32>
    %87 = vector.broadcast %0 : vector<8x1xf32> to vector<8x72xf32>
    %88 = arith.addf %86, %87 : vector<8x72xf32>
    %cst_103 = arith.constant 0.000000e+00 : f32
    %89 = vector.broadcast %cst_103 : f32 to vector<8x72xf32>
    %90 = arith.maximumf %88, %89 : vector<8x72xf32>
    %c1_104 = arith.constant 1 : index
    %c0_105 = arith.constant 0 : index
    %c0_106 = arith.constant 0 : index
    %91 = vector.load %arg7[%c1_104, %c0_105, %c0_106] : memref<2x8x72xf32, #tpu.memory_space<vmem>>, vector<1x8x72xf32>
    %92 = vector.shape_cast %91 : vector<1x8x72xf32> to vector<8x72xf32>
    %93 = vector.shape_cast %90 : vector<8x72xf32> to vector<1x8x72xf32>
    tpu.vector_store %arg7[%c1_104, %c0_105, %c0_106], %93 {strides = array<i32>} : memref<2x8x72xf32, #tpu.memory_space<vmem>>, vector<1x8x72xf32>,
    return
  }
  func.func @transform_0(%arg0: i32) -> (i32, i32, i32) {
    %c0_i32 = arith.constant 0 : i32
    %c0_i32_0 = arith.constant 0 : i32
    %c0_i32_1 = arith.constant 0 : i32
    return %arg0, %c0_i32, %c0_i32_0 : i32, i32, i32
  }
  func.func @transform_1(%arg0: i32) -> (i32, i32, i32) {
    %c0_i32 = arith.constant 0 : i32
    %c0_i32_0 = arith.constant 0 : i32
    %c0_i32_1 = arith.constant 0 : i32
    return %arg0, %c0_i32, %c0_i32_0 : i32, i32, i32
  }
  func.func @transform_2(%arg0: i32) -> (i32, i32, i32) {
    %c0_i32 = arith.constant 0 : i32
    %c0_i32_0 = arith.constant 0 : i32
    %c0_i32_1 = arith.constant 0 : i32
    return %arg0, %c0_i32, %c0_i32_0 : i32, i32, i32
  }
  func.func @transform_3(%arg0: i32) -> (i32, i32, i32) {
    %c0_i32 = arith.constant 0 : i32
    %c0_i32_0 = arith.constant 0 : i32
    %c0_i32_1 = arith.constant 0 : i32
    return %arg0, %c0_i32, %c0_i32_0 : i32, i32, i32
  }
  func.func @transform_4(%arg0: i32) -> (i32, i32) {
    %c0_i32 = arith.constant 0 : i32
    %c0_i32_0 = arith.constant 0 : i32
    %c0_i32_1 = arith.constant 0 : i32
    return %c0_i32, %c0_i32_0 : i32, i32
  }
  func.func @transform_5(%arg0: i32) -> (i32, i32) {
    %c0_i32 = arith.constant 0 : i32
    %c0_i32_0 = arith.constant 0 : i32
    %c0_i32_1 = arith.constant 0 : i32
    return %c0_i32, %c0_i32_0 : i32, i32
  }
  func.func @transform_6(%arg0: i32) -> (i32, i32, i32) {
    %c0_i32 = arith.constant 0 : i32
    %c0_i32_0 = arith.constant 0 : i32
    %c0_i32_1 = arith.constant 0 : i32
    return %arg0, %c0_i32, %c0_i32_0 : i32, i32, i32
  }
}

</mosaic_0001>

<bundles_post_ra>
// kernel: simple_stem_in.1
= control target key start
LH: loop header
LB: loop body
LE: loop exit
PB: predicated region body
PF: predicated region fallthrough
CT: control target
= control target key end

     0   :  { %vm26_vm0 = vcmask 582656   ;;  %vm28_vm1 = vcmask 584706   ;;  %v466_v2 = vmov 0.0   ;;  %v467_v3 = vmov 0   ;;  %s468_s25 = smov 118   ;;  %s469_s28 = smov 119   ;;  %s616_s0 = inlined_call_operand.vmem [shape: bf16[2,4,82], index: 0, kind: input, shape index: {}]   ;;  %s617_s1 = inlined_call_operand.vmem [shape: bf16[2,4,82], index: 1, kind: input, shape index: {}]   ;;  %s618_s3 = inlined_call_operand.vmem [shape: bf16[2,4,82], index: 3, kind: input, shape index: {}]   ;;  %s619_s2 = inlined_call_operand.vmem [shape: bf16[2,4,82], index: 2, kind: input, shape index: {}]   ;;  %s620_s5 = inlined_call_operand.vmem [shape: f32[8,1], index: 5, kind: input, shape index: {}]   ;;  %s621_s4 = inlined_call_operand.vmem [shape: bf16[8,72], index: 4, kind: input, shape index: {}]   ;;  %s622_s6 = inlined_call_operand.vmem [shape: f32[2,8,72], index: 6, kind: output, shape index: {}]  }
   0x1   :  { %v381_v0 = vld.sshfl [vmem:[%s616_s0] sm:$0x3 pattern:$0x76325410]  ;;  %v388_v1 = vld [vmem:[%s616_s0 + $0x2] sm:$0x3]  ;;  %421 = vmatprep.subr.bf16.mxu0 %v466_v2  ;;  %435 = vmatprep.subr.bf16.mxu1 %v466_v2 }
   0x2   :  { %29 = vst.msk [vmem:[#allocation2] sm:$0xc] %vm28_vm1, %v467_v3  ;;  %32 = vst.msk [vmem:[#allocation2 + $0x4] sm:$0xc] %vm28_vm1, %v467_v3  ;;  %104 = vrot.lane.b32.xlu0 %v381_v0, %s468_s25  ;;  %v25_v4 = vld [vmem:[%s616_s0] sm:$0x3]  ;;  %76 = vrot.lane.b32.xlu1 %v381_v0, %s469_s28 }
   0x3   :  { %46 = vst.msk [vmem:[#allocation2 + $0x8] sm:$0xc] %vm28_vm1, %v467_v3  ;;  %49 = vst.msk [vmem:[#allocation2 + $0xc] sm:$0xc] %vm28_vm1, %v467_v3  ;;  %v30_v6 = vld [vmem:[%s617_s1] sm:$0x3]  ;;  %455 = vset.pattern.permute.xlu0 %v467_v3 }
   0x4   :  { %52 = vst.msk [vmem:[#allocation2 + $0x10] sm:$0xc] %vm28_vm1, %v467_v3  ;;  %66 = vst.msk [vmem:[#allocation2 + $0x14] sm:$0xc] %vm28_vm1, %v467_v3  ;;  %v389_v8 = vld [vmem:[%s617_s1 + $0x2] sm:$0x3] }
   0x5   :  { %80 = vst.msk [vmem:[#allocation2 + $0x18] sm:$0xc] %vm28_vm1, %v467_v3  ;;  %94 = vst.msk [vmem:[#allocation2 + $0x1c] sm:$0xc] %vm28_vm1, %v467_v3  ;;  %v47_v9 = vld [vmem:[%s619_s2] sm:$0x3] }
   0x6   :  { %204 = vst.msk [vmem:[#allocation2 + $0x24] sm:$0xc] %vm28_vm1, %v467_v3  ;;  %208 = vst.msk [vmem:[#allocation2 + $0x28] sm:$0xc] %vm28_vm1, %v467_v3  ;;  %v392_v10 = vld [vmem:[%s619_s2 + $0x2] sm:$0x3] }
   0x7   :  { %222 = vst.msk [vmem:[#allocation2 + $0x2c] sm:$0xc] %vm28_vm1, %v467_v3  ;;  %226 = vst.msk [vmem:[#allocation2 + $0x30] sm:$0xc] %vm28_vm1, %v467_v3  ;;  %v50_v11 = vld [vmem:[%s618_s3] sm:$0x3] }
   0x8   :  { %230 = vst.msk [vmem:[#allocation2 + $0x34] sm:$0xc] %vm28_vm1, %v467_v3  ;;  %244 = vst.msk [vmem:[#allocation2 + $0x38] sm:$0xc] %vm28_vm1, %v467_v3  ;;  %v393_v13 = vld [vmem:[%s618_s3 + $0x2] sm:$0x3] }
   0x9   :  { %258 = vst.msk [vmem:[#allocation2 + $0x3c] sm:$0xc] %vm28_vm1, %v467_v3  ;;  %272 = vst.msk [vmem:[#allocation2 + $0x40] sm:$0xc] %vm28_vm1, %v467_v3  ;;  %s470_s26 = smov 127   ;;  %vm471_vm2 = vmmov 0  }
   0xa   :  { %203 = vst.msk [vmem:[#allocation2 + $0x24] sm:$0x3] %vm26_vm0, %v388_v1  ;;  %v401_v5 = vld.sshfl [vmem:[%s616_s0 + $0x2] sm:$0x3 pattern:$0x76325410]  ;;  %431 = vmatprep.mubr.msk.bf16.mxu0 %vm471_vm2, %v466_v2  ;;  %445 = vmatprep.mubr.msk.bf16.mxu1 %vm471_vm2, %v466_v2 }
   0xb   :  { %27 = vst.msk [vmem:[#allocation2] sm:$0x3] %vm26_vm0, %v25_v4  ;;  %v380_v7 = vld.sshfl [vmem:[%s617_s1] sm:$0x3 pattern:$0x76325410]  ;;  %282 = vrot.lane.b32.xlu0 %v401_v5, %s468_s25 }
   0xc   :  { %31 = vst.msk [vmem:[#allocation2 + $0x4] sm:$0x3] %vm26_vm0, %v30_v6  ;;  %207 = vst.msk [vmem:[#allocation2 + $0x28] sm:$0x3] %vm26_vm0, %v389_v8  ;;  %90 = vrot.lane.b32.xlu1 %v380_v7, %s469_s28  ;;  %v24_v16 = vld [vmem:[%s620_s5] sm:$0xff]  ;;  %vm155_vm3 = vcmask 1043456  }
   0xd   :  { %48 = vst.msk [vmem:[#allocation2 + $0xc] sm:$0x3] %vm26_vm0, %v47_v9  ;;  %225 = vst.msk [vmem:[#allocation2 + $0x30] sm:$0x3] %vm26_vm0, %v392_v10  ;;  %v118_v39 = vld [vmem:[%s621_s4] sm:$0xf] }
   0xe   :  { %v399_v12 = vld.sshfl [vmem:[%s617_s1 + $0x2] sm:$0x3 pattern:$0x76325410]  ;;  %51 = vst.msk [vmem:[#allocation2 + $0x10] sm:$0x3] %vm26_vm0, %v50_v11 }
   0xf   :  { %229 = vst.msk [vmem:[#allocation2 + $0x34] sm:$0x3] %vm26_vm0, %v393_v13  ;;  %254 = vrot.lane.b32.xlu0 %v401_v5, %s469_s28  ;;  %v378_v14 = vld.sshfl [vmem:[%s619_s2] sm:$0x3 pattern:$0x76325410] }
  0x10   :  { %268 = vrot.lane.b32.xlu1 %v399_v12, %s469_s28  ;;  %v395_v15 = vld.sshfl [vmem:[%s619_s2 + $0x2] sm:$0x3 pattern:$0x76325410]  ;;  %vm151_vm4 = vcmask 588800  }
  0x11   :  { %v296_v40 = vld [vmem:[%s621_s4] sm:$0xf] }
  0x13   :  { %62 = vrot.lane.b32.xlu0 %v378_v14, %s470_s26  ;;  %v464_v37 = vld [vmem:[#allocation2] sm:$0xff]  }
  0x14   :  { %240 = vrot.lane.b32.xlu1 %v395_v15, %s470_s26  ;;  %v465_v38 = vld [vmem:[#allocation2 + $0x24] sm:$0xff]  }
  0x17   :  { %42 = vrot.lane.b32.xlu0 %v381_v0, %s470_s26 }
  0x18   :  { %218 = vrot.lane.b32.xlu1 %v401_v5, %s470_s26 }
  0x1b   :  { %121 = vperm.xlu0 %455, %v24_v16  }
  0x74   :  { %v105_v17 = vpop.permute.xlu0 %104  ;;  %v77_v18 = vpop.permute.xlu1 %76 }
  0x75   :  { %107 = vst.msk [vmem:[#allocation2 + $0x20] sm:$0x3] %vm26_vm0, %v105_v17  ;;  %79 = vst.msk [vmem:[#allocation2 + $0x18] sm:$0x3] %vm26_vm0, %v77_v18 }
  0x7c   :  { %v456_v23 = vld [vmem:[#allocation2 + $0x20] ss:$0 sps:$4 sm:$0xff]  }
  0x7d   :  { %v283_v19 = vpop.permute.xlu0 %282  ;;  %v157_v24 = vsel %vm155_vm3, %v456_v23, 0 }
  0x7e   :  { %v91_v20 = vpop.permute.xlu1 %90  ;;  %285 = vst.msk [vmem:[#allocation2 + $0x44] sm:$0x3] %vm26_vm0, %v283_v19  ;;  %422 = vmatpush3.bf16.msra.mxu0 %v157_v24 }
  0x7f   :  { %93 = vst.msk [vmem:[#allocation2 + $0x1c] sm:$0x3] %vm26_vm0, %v91_v20  ;;  %423 = vmatprep.subr.bf16.mxu0 %v466_v2 }
  0x81   :  { %v255_v21 = vpop.permute.xlu0 %254 }
  0x82   :  { %v269_v22 = vpop.permute.xlu1 %268  ;;  %257 = vst.msk [vmem:[#allocation2 + $0x3c] sm:$0x3] %vm26_vm0, %v255_v21 }
  0x83   :  { %271 = vst.msk [vmem:[#allocation2 + $0x40] sm:$0x3] %vm26_vm0, %v269_v22 }
  0x85   :  { %v63_v25 = vpop.permute.xlu0 %62  ;;  %v458_v28 = vld [vmem:[#allocation2 + $0x44] ss:$0 sps:$4 sm:$0xff]  }
  0x86   :  { %v241_v26 = vpop.permute.xlu1 %240  ;;  %v457_v27 = vld [vmem:[#allocation2 + $0x18] sm:$0xff]   ;;  %65 = vst.msk [vmem:[#allocation2 + $0x14] sm:$0x3] %vm26_vm0, %v63_v25  ;;  %v328_v29 = vsel %vm155_vm3, %v458_v28, 0 }
  0x87   :  { %243 = vst.msk [vmem:[#allocation2 + $0x38] sm:$0x3] %vm26_vm0, %v241_v26  ;;  %424 = vmatpush3.bf16.msra.mxu0 %v457_v27  ;;  %436 = vmatpush3.bf16.msra.mxu1 %v328_v29 }
  0x88   :  { %425 = vmatprep.subr.bf16.mxu0 %v466_v2  ;;  %437 = vmatprep.subr.bf16.mxu1 %v466_v2 }
  0x89   :  { %v43_v30 = vpop.permute.xlu0 %42 }
  0x8a   :  { %v219_v31 = vpop.permute.xlu1 %218  ;;  %v459_v32 = vld [vmem:[#allocation2 + $0x3c] sm:$0xff]   ;;  %45 = vst.msk [vmem:[#allocation2 + $0x8] sm:$0x3] %vm26_vm0, %v43_v30 }
  0x8b   :  { %221 = vst.msk [vmem:[#allocation2 + $0x2c] sm:$0x3] %vm26_vm0, %v219_v31  ;;  %438 = vmatpush3.bf16.msra.mxu1 %v459_v32 }
  0x8c   :  { %439 = vmatprep.subr.bf16.mxu1 %v466_v2 }
  0x8d   :  { %v460_v33 = vld [vmem:[#allocation2 + $0x10] sm:$0xff]  }
  0x8e   :  { %v461_v34 = vld [vmem:[#allocation2 + $0x34] sm:$0xff]   ;;  %426 = vmatpush3.bf16.msra.mxu0 %v460_v33 }
  0x8f   :  { %427 = vmatprep.subr.bf16.mxu0 %v466_v2  ;;  %440 = vmatpush3.bf16.msra.mxu1 %v461_v34 }
  0x90   :  { %441 = vmatprep.subr.bf16.mxu1 %v466_v2 }
  0x91   :  { %v462_v35 = vld [vmem:[#allocation2 + $0x8] sm:$0xff]  }
  0x92   :  { %v463_v36 = vld [vmem:[#allocation2 + $0x2c] sm:$0xff]   ;;  %428 = vmatpush3.bf16.msra.mxu0 %v462_v35 }
  0x93   :  { %429 = vmatprep.subr.bf16.mxu0 %v466_v2  ;;  %442 = vmatpush3.bf16.msra.mxu1 %v463_v36 }
  0x94   :  { %443 = vmatprep.subr.bf16.mxu1 %v466_v2 }
  0x96   :  { %430 = vmatpush3.bf16.msra.mxu0 %v464_v37  ;;  %v122_v41 = vpop.permute.xlu0 %121 }
  0x97   :  { %444 = vmatpush3.bf16.msra.mxu1 %v465_v38 }
  0x99   :  { %432 = vmatmul.mubr.msk.bf16.vlgmr.msra.gmra.mxu0 %vm151_vm4, %v118_v39 }
  0x9a   :  { %446 = vmatmul.mubr.msk.bf16.vlgmr.msra.gmra.mxu1 %vm151_vm4, %v296_v40 }
 0x159   :  { %v193_v42 = vpop.f32.mrf.mxu0 }
 0x15a   :  { %v194_v43 = vadd.f32 %v193_v42, %v122_v41  ;;  %v364_v44 = vpop.f32.mrf.mxu1 }
 0x15b   :  { %v433_v45 = vpop.f32.mrf.mxu0  ;;  %v365_v47 = vadd.f32 %v364_v44, %v122_v41 }
 0x15c   :  { %v199_v46 = vmax.f32 %v194_v43, 0.0  ;;  %v447_v48 = vpop.f32.mrf.mxu1 }
 0x15d   :  { %v196_v49 = vpop.f32.mrf.mxu0  ;;  %v370_v50 = vmax.f32 %v365_v47, 0.0 }
 0x15e   :  { %200 = vst.msk [vmem:[%s622_s6] sm:$0xff] %vm151_vm4, %v199_v46  ;;  %v367_v51 = vpop.f32.mrf.mxu1 }
 0x15f   :  { %v434_v52 = vpop.f32.mrf.mxu0  ;;  %408 = vst.msk [vmem:[%s622_s6 + $0x8] sm:$0xff] %vm151_vm4, %v370_v50 }
 0x160   :  { %v448_v53 = vpop.f32.mrf.mxu1 }

</bundles_post_ra>
